<compile_context>
chip_gen: v7x
topology: tpu7x:2x2x1
jax: 0.10.0
libtpu: 0.0.40
codegen_flags: <defaults>
</compile_context>

<pallas_src>
import functools

import jax
import jax.numpy as jnp
from jax.experimental import pallas as pl
from jax.experimental.pallas import tpu as pltpu

LANES = 128
SUBLANES = 8
# (8192, 128) f32 tile = 4 MiB per input; 2 inputs x 2 buffers = 16 MiB VMEM.
TARGET_TM = 8192
# Wide VMEM accumulator (keeps per-step fold live ranges short at tm=8192).
ACC_ROW_CHOICES = (64, 32, 16, 8)
VMEM_LIMIT_BYTES = 32 * 1024 * 1024
# Below this element count a fused XLA reduce beats pallas_call overhead.
SMALL_N = 1 << 18


def _sq_diff_partial_kernel(o_ref, t_ref, out_ref, acc_ref, *, tm, rows, steps,
                            num_blocks, needs_mask):
    """Per-split partial sum of squared differences.

    Grid: (num_splits, steps) with ("parallel", "arbitrary") semantics.
    o_ref, t_ref : (tm, LANES) VMEM tiles (native dtype; cast to f32 here)
    out_ref      : (1, 1) SMEM  -- partial sum for this split
    acc_ref      : (acc_rows, LANES) f32 VMEM scratch -- vector accumulator
    """
    c = pl.program_id(0)
    i = pl.program_id(1)

    @pl.when(i == 0)
    def _():
        acc_ref[...] = jnp.zeros_like(acc_ref)

    d = o_ref[...].astype(jnp.float32) - t_ref[...].astype(jnp.float32)
    dsq = d * d

    acc_rows = acc_ref.shape[0]
    groups = tm // acc_rows

    def fold(x):
        # Sublane-group fold onto the persistent accumulator: pure VPU adds in
        # the hot loop; the single cross-lane/sublane reduce happens once per
        # split in the final pl.when below.
        if groups == 1:
            return x
        return jnp.sum(x.reshape(groups, acc_rows, LANES), axis=0)

    if needs_mask:
        # Only the ragged edge block (and any clamped/repeated blocks past the
        # logical extent) pay the iota+compare+select; interior steps take the
        # unmasked fast path so the kernel stays memory-bound (v7x VALU slack).
        blk = c * steps + i          # unclamped logical block index
        last = num_blocks - 1

        @pl.when(blk < last)
        def _():
            acc_ref[...] += fold(dsq)

        @pl.when(blk >= last)
        def _():
            row_ids = blk * tm + jax.lax.broadcasted_iota(
                jnp.int32, (tm, LANES), 0)
            acc_ref[...] += fold(jnp.where(row_ids < rows, dsq, 0.0))
    else:
        acc_ref[...] += fold(dsq)

    @pl.when(i == steps - 1)
    def _():
        # Single cross-lane/sublane reduction per split.
        out_ref[0, 0] = jnp.sum(acc_ref[...])


def _mse_sum_pallas(flat_o, flat_t, n):
    """Sum((o - t)^2) over the first n elements via a streaming Pallas reduce."""
    # Pad only when n is not lane (128) aligned; the zero pad contributes
    # exactly 0 to the squared-difference sum, so no extra masking is needed.
    # TODO(synk): the pad still materializes one HBM copy of both inputs for
    # non-128-aligned n; a copy-free fix would need element-granular manual DMA.
    pad = (-n) % LANES
    if pad:
        flat_o = jnp.pad(flat_o, (0, pad))
        flat_t = jnp.pad(flat_t, (0, pad))
    rows = (n + pad) // LANES
    o2 = flat_o.reshape(rows, LANES)
    t2 = flat_t.reshape(rows, LANES)

    # Tile rows: a multiple of 8 whenever possible so the block satisfies the
    # (8, 128) constraint without relying on the equal-to-full-dim escape.
    if rows % SUBLANES == 0:
        tm = min(TARGET_TM, rows)
    elif rows > SUBLANES:
        tm = min(TARGET_TM, rows - (rows % SUBLANES))  # ragged tail gets masked
    else:
        tm = rows  # tiny input; single block equal to the full array dims

    num_blocks = pl.cdiv(rows, tm)
    # Split the reduction across two TensorCores when there is enough work
    # (v7x megacore; serializes harmlessly on single-core v5e/v6e).
    num_splits = 2 if num_blocks >= 2 else 1
    steps = pl.cdiv(num_blocks, num_splits)
    needs_mask = (num_splits * steps * tm) != rows

    acc_rows = next((r for r in ACC_ROW_CHOICES if tm % r == 0), 1)

    def in_map(c, i):
        # Clamp so the DMA window never starts past the array; out-of-range
        # logical blocks are fully masked to zero inside the kernel.
        return (jnp.minimum(c * steps + i, num_blocks - 1), 0)

    kernel = functools.partial(
        _sq_diff_partial_kernel, tm=tm, rows=rows, steps=steps,
        num_blocks=num_blocks, needs_mask=needs_mask)

    partials = pl.pallas_call(
        kernel,
        out_shape=jax.ShapeDtypeStruct((num_splits, 1), jnp.float32),
        grid_spec=pltpu.PrefetchScalarGridSpec(
            num_scalar_prefetch=0,
            grid=(num_splits, steps),
            in_specs=[
                pl.BlockSpec((tm, LANES), in_map),
                pl.BlockSpec((tm, LANES), in_map),
            ],
            out_specs=pl.BlockSpec((1, 1), lambda c, i: (c, 0),
                                   memory_space=pltpu.SMEM),
            scratch_shapes=[pltpu.VMEM((acc_rows, LANES), jnp.float32)],
        ),
        compiler_params=pltpu.CompilerParams(
            dimension_semantics=("parallel", "arbitrary"),
            vmem_limit_bytes=VMEM_LIMIT_BYTES,
        ),
    )(o2, t2)

    return jnp.sum(partials)


def embedder_loss(outputs, targets, dis_func="MSE", min_pallas_elems=SMALL_N):
    """Pallas equivalent of EmbedderLoss.forward. Returns (E_loss_T0, E_loss0)."""
    if dis_func != "MSE":
        # TODO(synk): Soft_DTW branch (SoftDTW(gamma=0.001, normalize=True)) has
        # no clean Pallas equivalent here; only the MSE branch is implemented.
        raise NotImplementedError("Only dis_func='MSE' is implemented as a Pallas kernel.")

    assert outputs.shape == targets.shape
    n = outputs.size

    if n < max(min_pallas_elems, SUBLANES * LANES):
        # Small-n fast path: a fused XLA reduce beats pallas_call launch +
        # single-grid-step overhead below roughly one tile of work.
        d = outputs.astype(jnp.float32) - targets.astype(jnp.float32)
        mse = jnp.mean(d * d)
    else:
        # Flatten in native dtype (free; the kernel casts per-tile so HBM read
        # traffic stays at the input's natural width).
        flat_o = outputs.reshape(-1)
        flat_t = targets.reshape(-1)
        mse = _mse_sum_pallas(flat_o, flat_t, n) / jnp.float32(n)

    loss = jnp.float32(10.0) * jnp.sqrt(mse + jnp.float32(1e-10))
    return mse, loss


if __name__ == "__main__":
    key = jax.random.PRNGKey(0)
    keys = jax.random.split(key, 8)

    def ref_loss(o, t):
        m = jnp.mean((o.astype(jnp.float32) - t.astype(jnp.float32)) ** 2)
        return m, 10.0 * jnp.sqrt(m + 1e-10)

    def check(o, t, **kw):
        got_mse, got_loss = embedder_loss(o, t, dis_func="MSE", **kw)
        jax.block_until_ready((got_mse, got_loss))
        want_mse, want_loss = ref_loss(o, t)
        assert jnp.allclose(got_mse, want_mse, rtol=1e-4, atol=1e-6), (got_mse, want_mse)
        assert jnp.allclose(got_loss, want_loss, rtol=1e-4, atol=1e-6), (got_loss, want_loss)

    # 1) Small NCHW example consistent with the module's forward; force the
    #    Pallas path (single aligned block, unmasked).
    o1 = jax.random.normal(keys[0], (2, 4, 16, 16), jnp.float32)
    t1 = jax.random.normal(keys[1], (2, 4, 16, 16), jnp.float32)
    check(o1, t1, min_pallas_elems=0)

    # 2) Large enough to take the kernel path by default and exercise the
    #    2-way split plus the masked ragged-edge block (rows > TARGET_TM).
    o2 = jax.random.normal(keys[2], (8, 8, 128, 130), jnp.float32)
    t2 = jax.random.normal(keys[3], (8, 8, 128, 130), jnp.float32)
    check(o2, t2)

    # 3) Non-128-aligned element count: exercises the zero-pad path plus the
    #    row-granularity edge mask.
    o3 = jax.random.normal(keys[4], (2, 4, 17, 17), jnp.float32)
    t3 = jax.random.normal(keys[5], (2, 4, 17, 17), jnp.float32)
    check(o3, t3, min_pallas_elems=0)

    # 4) Default small-n fast path (no pallas_call), bf16 inputs.
    o4 = jax.random.normal(keys[6], (2, 4, 16, 16), jnp.bfloat16)
    t4 = jax.random.normal(keys[7], (2, 4, 16, 16), jnp.bfloat16)
    check(o4, t4)

    print("KERNEL_OK")
</pallas_src>

<mosaic_0001>
module attributes {stable_mosaic.version = 11 : i64} {
  func.func @_sq_diff_partial_kernel(%arg0: i32, %arg1: i32, %arg2: memref<16x128xf32, #tpu.memory_space<vmem>>, %arg3: memref<16x128xf32, #tpu.memory_space<vmem>>, %arg4: memref<1x1xf32, #tpu.memory_space<smem>>, %arg5: memref<16x128xf32, #tpu.memory_space<vmem>>) attributes {dimension_semantics = [#tpu.dimension_semantics<parallel>, #tpu.dimension_semantics<arbitrary>], iteration_bounds = array<i64: 1, 1>, scalar_prefetch = 0 : i64, scratch_operands = 1 : i64, tpu.core_type = #tpu.core_type<tc>, window_params = [{transform_indices = @transform_0, window_bounds = array<i64: 16, 128>}, {transform_indices = @transform_1, window_bounds = array<i64: 16, 128>}, {transform_indices = @transform_2, window_bounds = array<i64: 1, 1>}]} {
    %c0_i32 = arith.constant 0 : i32
    %0 = arith.cmpi eq, %arg1, %c0_i32 : i32
    %1 = arith.extui %0 : i1 to i32
    %c0_i32_0 = arith.constant 0 : i32
    %2 = arith.cmpi ne, %1, %c0_i32_0 : i32
    scf.if %2 {
      %cst = arith.constant 0.000000e+00 : f32
      %13 = vector.broadcast %cst : f32 to vector<16x128xf32>
      %c0_10 = arith.constant 0 : index
      %c0_11 = arith.constant 0 : index
      %14 = vector.load %arg5[%c0_10, %c0_11] : memref<16x128xf32, #tpu.memory_space<vmem>>, vector<16x128xf32>
      tpu.vector_store %arg5[%c0_10, %c0_11], %13 {strides = array<i32>} : memref<16x128xf32, #tpu.memory_space<vmem>>, vector<16x128xf32>,
    } else {
    }
    %c0 = arith.constant 0 : index
    %c0_1 = arith.constant 0 : index
    %3 = vector.load %arg2[%c0, %c0_1] : memref<16x128xf32, #tpu.memory_space<vmem>>, vector<16x128xf32>
    %c0_2 = arith.constant 0 : index
    %c0_3 = arith.constant 0 : index
    %4 = vector.load %arg3[%c0_2, %c0_3] : memref<16x128xf32, #tpu.memory_space<vmem>>, vector<16x128xf32>
    %5 = arith.subf %3, %4 : vector<16x128xf32>
    %6 = arith.mulf %5, %5 : vector<16x128xf32>
    %c0_4 = arith.constant 0 : index
    %c0_5 = arith.constant 0 : index
    %7 = vector.load %arg5[%c0_4, %c0_5] : memref<16x128xf32, #tpu.memory_space<vmem>>, vector<16x128xf32>
    %8 = arith.addf %7, %6 : vector<16x128xf32>
    %c0_6 = arith.constant 0 : index
    %c0_7 = arith.constant 0 : index
    %9 = vector.load %arg5[%c0_6, %c0_7] : memref<16x128xf32, #tpu.memory_space<vmem>>, vector<16x128xf32>
    tpu.vector_store %arg5[%c0_6, %c0_7], %8 {strides = array<i32>} : memref<16x128xf32, #tpu.memory_space<vmem>>, vector<16x128xf32>,
    %c0_i32_8 = arith.constant 0 : i32
    %10 = arith.cmpi eq, %arg1, %c0_i32_8 : i32
    %11 = arith.extui %10 : i1 to i32
    %c0_i32_9 = arith.constant 0 : i32
    %12 = arith.cmpi ne, %11, %c0_i32_9 : i32
    scf.if %12 {
      %c0_10 = arith.constant 0 : index
      %c0_11 = arith.constant 0 : index
      %13 = vector.load %arg5[%c0_10, %c0_11] : memref<16x128xf32, #tpu.memory_space<vmem>>, vector<16x128xf32>
      %14 = vector.shape_cast %13 : vector<16x128xf32> to vector<1x16x128xf32>
      %cst = arith.constant dense<0.000000e+00> : vector<1xf32>
      %15 = vector.multi_reduction <add>, %14, %cst [1, 2] : vector<1x16x128xf32> to vector<1xf32>
      %16 = vector.shape_cast %15 : vector<1xf32> to vector<1x1x1xf32>
      %17 = vector.extract %16[0, 0, 0] : f32 from vector<1x1x1xf32>
      %c0_12 = arith.constant 0 : index
      %c0_13 = arith.constant 0 : index
      %18 = memref.load %arg4[%c0_12, %c0_13] : memref<1x1xf32, #tpu.memory_space<smem>>
      memref.store %17, %arg4[%c0_12, %c0_13] : memref<1x1xf32, #tpu.memory_space<smem>>
    } else {
    }
    return
  }
  func.func @transform_0(%arg0: i32, %arg1: i32) -> (i32, i32) {
    %c1_i32 = arith.constant 1 : i32
    %0 = arith.muli %arg0, %c1_i32 : i32
    %1 = arith.addi %0, %arg1 : i32
    %c0_i32 = arith.constant 0 : i32
    %2 = arith.minsi %1, %c0_i32 : i32
    %c0_i32_0 = arith.constant 0 : i32
    %c0_i32_1 = arith.constant 0 : i32
    return %2, %c0_i32_0 : i32, i32
  }
  func.func @transform_1(%arg0: i32, %arg1: i32) -> (i32, i32) {
    %c1_i32 = arith.constant 1 : i32
    %0 = arith.muli %arg0, %c1_i32 : i32
    %1 = arith.addi %0, %arg1 : i32
    %c0_i32 = arith.constant 0 : i32
    %2 = arith.minsi %1, %c0_i32 : i32
    %c0_i32_0 = arith.constant 0 : i32
    %c0_i32_1 = arith.constant 0 : i32
    return %2, %c0_i32_0 : i32, i32
  }
  func.func @transform_2(%arg0: i32, %arg1: i32) -> (i32, i32) {
    %c0_i32 = arith.constant 0 : i32
    %c0_i32_0 = arith.constant 0 : i32
    return %arg0, %c0_i32 : i32, i32
  }
}

</mosaic_0001>

<bundles_post_ra>
// kernel: tpu_custom_call.1
= control target key start
LH: loop header
LB: loop body
LE: loop exit
PB: predicated region body
PF: predicated region fallthrough
CT: control target
= control target key end

     0   :  { %7 = vsyncpa [#allocation4], 0  ;;  %s239_s0 = inlined_call_operand.hbm [shape: f32[16,128], index: 0, kind: input, shape index: {}]   ;;  %s240_s1 = inlined_call_operand.hbm [shape: f32[16,128], index: 1, kind: input, shape index: {}]   ;;  %s241_s2 = inlined_call_operand.hbm [shape: f32[1,1], index: 2, kind: output, shape index: {}]  }
   0x1   :  { %8 = vsyncpa [#allocation7], 0 }
   0x2   :  { %9 = vsyncpa [#allocation5], 0  ;;  %s183_s9 = smov [#allocation3]   ;;  %s123_s13 = scalar_lea.hbm %s239_s0, 256 }
   0x3   :  { %s21_s10 = sshll.u32 %s183_s9, 4  ;;  %p124_p0 = scmp.ne.s32.totalorder %s239_s0, %s123_s13  ;;  %s22_s10 = int_to_ptr.vmem [resolvable:$true] %s21_s10 }
   0x4   :  { %p127_p1 = scmp.lt.u32.totalorder %s123_s13, %s239_s0 }
   0x6   :  { %p129_p2 = pnand %p127_p1, %p124_p0 }
   0x8   :  { %132 = shalt.err (!%p129_p2)
}
   0x9   :  { %s133_s18 = scalar_lea.vmem %s22_s10, 256  ;;  %p138_p4 = scmp.lt.s32.totalorder %s22_s10, %s22_s10 }
   0xa   :  { %p134_p3 = scmp.ne.s32.totalorder %s22_s10, %s133_s18  ;;  %p139_p5 = scmp.lt.s32.totalorder %s133_s18, %s133_s18 }
   0xc   :  { %p140_p6 = por %p139_p5, %p138_p4 }
   0xe   :  { %p141_p7 = pnand %p140_p6, %p134_p3 }
  0x10   :  { %144 = shalt.err (!%p141_p7)
}
  0x11   :  { %s184_s19 = smov 128   ;;  %s185_s20 = smov 8  }
  0x12   :  { %27 = dma.hbm_to_vmem [thread:$0]  %s239_s0, 256, %s22_s10, [#allocation4], %s184_s19, %s184_s19, %s185_s20  }
  0x13   :  { %s186_s23 = smov [#allocation6]   ;;  %s145_s27 = scalar_lea.hbm %s240_s1, 256 }
  0x14   :  { %s39_s24 = sshll.u32 %s186_s23, 4  ;;  %p146_p8 = scmp.ne.s32.totalorder %s240_s1, %s145_s27  ;;  %s40_s24 = int_to_ptr.vmem [resolvable:$true] %s39_s24 }
  0x15   :  { %p149_p9 = scmp.lt.u32.totalorder %s145_s27, %s240_s1 }
  0x17   :  { %p151_p10 = pnand %p149_p9, %p146_p8 }
  0x19   :  { %154 = shalt.err (!%p151_p10)
}
  0x1a   :  { %s155_s4 = scalar_lea.vmem %s40_s24, 256  ;;  %p160_p12 = scmp.lt.s32.totalorder %s40_s24, %s40_s24 }
  0x1b   :  { %p156_p11 = scmp.ne.s32.totalorder %s40_s24, %s155_s4  ;;  %p161_p13 = scmp.lt.s32.totalorder %s155_s4, %s155_s4 }
  0x1d   :  { %p162_p0 = por %p161_p13, %p160_p12 }
  0x1f   :  { %p163_p1 = pnand %p162_p0, %p156_p11 }
  0x21   :  { %166 = shalt.err (!%p163_p1)
}
  0x22   :  { %45 = dma.hbm_to_vmem [thread:$0]  %s240_s1, 256, %s40_s24, [#allocation7], %s184_s19, %s184_s19, %s185_s20  }
  0x23   :  { %177 = dma.done.wait [#allocation4], 256  }
  0x24   :  { %178 = vsyncadd [#allocation4], 4294967040 }
  0x25   :  { %179 = dma.done.wait [#allocation7], 256  }
  0x26   :  { %180 = vsyncadd [#allocation7], 4294967040  ;;  %v66_v0 = vld [vmem:[#allocation3] sm:$0xff]  ;;  %v67_v1 = vld [vmem:[#allocation3 + $0x8] sm:$0xff]  ;;  %s167_s8 = scalar_lea.hbm %s241_s2, 16 }
  0x27   :  { %v68_v2 = vld [vmem:[#allocation6] sm:$0xff]  ;;  %v69_v3 = vld [vmem:[#allocation6 + $0x8] sm:$0xff]  ;;  %p168_p2 = scmp.ne.s32.totalorder %s241_s2, %s167_s8  ;;  %p171_p3 = scmp.lt.u32.totalorder %s167_s8, %s241_s2 }
  0x28   :  { %v70_v4 = vsub.f32 %v66_v0, %v68_v2  ;;  %v71_v5 = vsub.f32 %v67_v1, %v69_v3 }
  0x29   :  { %p173_p4 = pnand %p171_p3, %p168_p2 }
  0x2a   :  { %v72_v6 = vmul.f32 %v70_v4, %v70_v4  ;;  %v73_v7 = vmul.f32 %v71_v5, %v71_v5 }
  0x2c   :  { %v85_v8 = vadd.f32 %v73_v7, %v72_v6 }
  0x2e   :  { %86 = vadd.xlane.f32.xlu0 %v85_v8 }
  0xbb   :  { %v87_v9 = vpop.xlane.xlu0 %86 }
  0xbc   :  { %v88_v10 = vrot.slane %v87_v9, 4 }
  0xbe   :  { %v89_v11 = vadd.f32 %v88_v10, %v87_v9 }
  0xc0   :  { %v90_v12 = vrot.slane %v89_v11, 2 }
  0xc2   :  { %v91_v13 = vadd.f32 %v90_v12, %v89_v11 }
  0xc4   :  { %v92_v14 = vrot.slane %v91_v13, 1 }
  0xc6   :  { %v93_v15 = vadd.f32 %v92_v14, %v91_v13 }
  0xc8   :  { %116 = vpush %v93_v15 }
  0xf9   :  { %s117_s1 = spop %116 }
  0xfa   :  { %96 = sst [smem:[#allocation8]] %s117_s1 }
  0xfb   :  { %176 = shalt.err (!%p173_p4)
}
  0xfc   :  { %s187_s13 = smov [#allocation8]  }
  0xfd   :  { %104 = dma.smem_to_hbm %s187_s13, 16, %s241_s2, [#allocation5]  }
  0xfe   :  { %181 = dma.done.wait [#allocation5], 16  }
  0xff   :  { %182 = vsyncadd [#allocation5], 4294967280 }
 0x100   :  { %108 = sfence }
 0x101   :  { %109 = vsyncpa [#allocation4], 1 }
 0x102   :  { %110 = vsyncpa [#allocation7], 1 }
 0x103   :  { %111 = vsyncpa [#allocation5], 1 }

</bundles_post_ra>
